<compile_context>
chip_gen: v7x
topology: tpu7x:2x2x1
jax: 0.10.0
libtpu: 0.0.40
codegen_flags: <defaults>
</compile_context>

<pallas_src>
import math

import jax
import jax.numpy as jnp
from jax.experimental import pallas as pl
from jax.experimental.pallas import tpu as pltpu


def _pick_tile(length: int, target: int) -> int:
    """Largest tile <= target dividing `length`; prefers multiples of 128."""
    if length <= target:
        return length
    for step in (128, 8):
        t = (target // step) * step
        while t >= step:
            if length % t == 0:
                return t
            t -= step
    # TODO(synk): pad-and-mask path for lengths with no multiple-of-8 divisor;
    # falling back to one full-length tile (VMEM risk for very long sequences).
    return length


# ---------------------------------------------------------------------------
# Per-head Linear projection: (R, D) @ (D, D) -> (R, D), row-tiled.
# Shared weight across batch/heads, so the wrapper flattens to 2-D.
# ---------------------------------------------------------------------------
def _proj_kernel(x_ref, wt_ref, o_ref):
    o_ref[...] = jnp.dot(x_ref[...], wt_ref[...],
                         preferred_element_type=jnp.float32).astype(o_ref.dtype)


def _project(x2, wt, out_dtype, row_tile_target=512):
    R, D = x2.shape
    tr = _pick_tile(R, row_tile_target)
    return pl.pallas_call(
        _proj_kernel,
        out_shape=jax.ShapeDtypeStruct((R, D), out_dtype),
        grid_spec=pltpu.PrefetchScalarGridSpec(
            num_scalar_prefetch=0,
            grid=(R // tr,),
            in_specs=[pl.BlockSpec((tr, D), lambda i: (i, 0)),
                      pl.BlockSpec((D, D), lambda i: (0, 0))],
            out_specs=pl.BlockSpec((tr, D), lambda i: (i, 0))),
        compiler_params=pltpu.CompilerParams(
            dimension_semantics=("parallel",)),
    )(x2, wt)


# ---------------------------------------------------------------------------
# Flash-style attention + fc_out over already-projected Q/K/V.
# ---------------------------------------------------------------------------
def _mha_kernel(qp_ref, kp_ref, vp_ref, wot_ref, bo_ref, out_ref,
                m_scr, l_scr, acc_scr):
    """One (batch, q-tile) per outer grid point; kv tiles on the inner axis.

    qp_ref          : (1, H, tq, D)   projected Q, 1/sqrt(D) already folded in
    kp_ref / vp_ref : (1, H, tk, D)   projected K / V
    wot_ref         : (E, E)          fc_out.weight.T (pre-transposed/cast)
    bo_ref          : (1, E)          fc_out.bias (f32)
    out_ref         : (1, tq, E)
    scratch         : m/l (H, tq, 1) f32, acc (H, tq, D) f32
    """
    H, D = qp_ref.shape[1], qp_ref.shape[3]
    kk = pl.program_id(2)

    @pl.when(kk == 0)
    def _init():
        m_scr[...] = jnp.full_like(m_scr, -jnp.inf)
        l_scr[...] = jnp.zeros_like(l_scr)
        acc_scr[...] = jnp.zeros_like(acc_scr)

    # scores = Qp @ Kp^T  (scale already folded into the Q projection weight);
    # contraction on d for all heads at once -> no in-kernel transpose.
    s = jnp.einsum("hqd,hkd->hqk", qp_ref[0], kp_ref[0],
                   preferred_element_type=jnp.float32)
    # TODO(synk): mask path (masked_fill(mask == 0, -1e9)) not implemented;
    # the reference forward is exercised with mask=None.

    # Flash-style online softmax: only O(tile) state stays live (f32).
    m_new = jnp.maximum(m_scr[...], jnp.max(s, axis=-1, keepdims=True))
    alpha = jnp.exp(m_scr[...] - m_new)
    p = jnp.exp(s - m_new)
    l_scr[...] = alpha * l_scr[...] + jnp.sum(p, axis=-1, keepdims=True)
    acc_scr[...] = alpha * acc_scr[...] + jnp.einsum(
        "hqk,hkd->hqd", p.astype(vp_ref.dtype), vp_ref[0],
        preferred_element_type=jnp.float32)
    m_scr[...] = m_new

    @pl.when(kk == pl.num_programs(2) - 1)
    def _finalize():
        # Softmax denominator via EUP approx reciprocal (not a VALU divide).
        inv_l = pl.reciprocal(l_scr[...], approx=True)        # (H, tq, 1)
        o = acc_scr[...] * inv_l                              # (H, tq, D) f32
        # permute(0,2,1,3) + reshape == concat heads along features (lane dim),
        # then ONE E-wide fc_out matmul (single MXU drain, no per-head adds).
        o2 = jnp.concatenate([o[h] for h in range(H)],
                             axis=-1).astype(wot_ref.dtype)   # (tq, E)
        y = jnp.dot(o2, wot_ref[...], preferred_element_type=jnp.float32)
        out_ref[0] = (y + bo_ref[...]).astype(out_ref.dtype)


def multi_head_attention(query, values, keys, wq, wk, wv, wo, bo, *, heads,
                         tq_target=128, tk_target=256,
                         mxu_dtype=jnp.bfloat16):
    """Forward pass of the PyTorch MultiHeadAttention module (mask=None).

    query/values/keys : (N, L, embed)
    wq/wk/wv          : (head_dim, head_dim)   PyTorch Linear weights (out, in)
    wo                : (embed, embed), bo : (embed,)
    mxu_dtype         : dtype fed to the MXU on all generations (bf16 default;
                        softmax math and accumulators stay f32).  Pass None
                        for full f32.
    """
    N, Lq, E = query.shape
    Lv, Lk = values.shape[1], keys.shape[1]
    D = E // heads
    assert D * heads == E, "embed_size must be divisible by heads"
    assert Lk == Lv, "key_len must equal value_len for attention @ V"

    cdt = jnp.float32 if mxu_dtype is None else mxu_dtype
    scale = 1.0 / math.sqrt(D)

    # Pre-transpose / pre-cast weights once; fold 1/sqrt(D) into Wq.
    wq_t = (wq.T * scale).astype(cdt)      # (D, D)
    wk_t = wk.T.astype(cdt)                # (D, D)
    wv_t = wv.T.astype(cdt)                # (D, D)
    wo_t = wo.T.astype(cdt)                # (E, E); rows = concat'd heads
    bo2 = bo.reshape(1, E).astype(jnp.float32)

    # PyTorch module's *literal* reshape (free view: (N, L, E) and
    # (N, H, L, D) share the same flat buffer), flattened to 2-D so all
    # heads/batches go through one fused projection matmul per tensor.
    qp = _project(query.reshape(N * heads * Lq, D).astype(cdt), wq_t, cdt)
    kp = _project(keys.reshape(N * heads * Lk, D).astype(cdt), wk_t, cdt)
    vp = _project(values.reshape(N * heads * Lv, D).astype(cdt), wv_t, cdt)
    qp = qp.reshape(N, heads, Lq, D)
    kp = kp.reshape(N, heads, Lk, D)
    vp = vp.reshape(N, heads, Lv, D)

    tq = _pick_tile(Lq, tq_target)
    tk = _pick_tile(Lk, tk_target)
    grid = (N, Lq // tq, Lk // tk)
    n_qtiles = Lq // tq

    csz = jnp.dtype(cdt).itemsize
    osz = jnp.dtype(query.dtype).itemsize
    # double-buffered input/output blocks + f32 scratch, plus headroom.
    vmem_need = (2 * (heads * tq * D + 2 * heads * tk * D + E * E) * csz
                 + 2 * E * 4
                 + 2 * tq * E * osz
                 + (2 * heads * tq + heads * tq * D) * 4)
    vmem_limit = int(min(max(vmem_need + (16 << 20), 32 << 20), 100 << 20))
    # TODO(synk): for very large E on v7x (64 MiB VMEM), tile fc_out's (E, E)
    # weight over output columns / single-buffer it instead of one full block.

    flops = (4 * N * heads * Lq * Lk * D      # scores + attn @ V
             + 2 * N * Lq * E * E)            # fc_out
    bytes_accessed = int(csz * (N * heads * Lq * D
                                + 2 * N * heads * Lk * D * n_qtiles
                                + E * E)
                         + 4 * E + osz * N * Lq * E)
    cost = pl.CostEstimate(flops=flops,
                           transcendentals=N * heads * Lq * Lk,
                           bytes_accessed=bytes_accessed)

    return pl.pallas_call(
        _mha_kernel,
        out_shape=jax.ShapeDtypeStruct((N, Lq, E), query.dtype),
        grid_spec=pltpu.PrefetchScalarGridSpec(
            num_scalar_prefetch=0,
            grid=grid,
            in_specs=[
                pl.BlockSpec((1, heads, tq, D), lambda n, j, kk: (n, 0, j, 0)),
                pl.BlockSpec((1, heads, tk, D), lambda n, j, kk: (n, 0, kk, 0)),
                pl.BlockSpec((1, heads, tk, D), lambda n, j, kk: (n, 0, kk, 0)),
                pl.BlockSpec((E, E), lambda n, j, kk: (0, 0)),
                pl.BlockSpec((1, E), lambda n, j, kk: (0, 0)),
            ],
            out_specs=pl.BlockSpec((1, tq, E), lambda n, j, kk: (n, j, 0)),
            scratch_shapes=[
                pltpu.VMEM((heads, tq, 1), jnp.float32),   # running max
                pltpu.VMEM((heads, tq, 1), jnp.float32),   # running sum
                pltpu.VMEM((heads, tq, D), jnp.float32),   # attn @ V accumulator
            ]),
        compiler_params=pltpu.CompilerParams(
            dimension_semantics=("parallel", "parallel", "arbitrary"),
            vmem_limit_bytes=vmem_limit),
        cost_estimate=cost,
    )(qp, kp, vp, wo_t, bo2)


def reference_mha(query, values, keys, wq, wk, wv, wo, bo, *, heads):
    """Pure-JAX transcription of the PyTorch forward (for verification)."""
    N, Lq, E = query.shape
    Lv, Lk = values.shape[1], keys.shape[1]
    D = E // heads
    q = query.reshape(N, heads, Lq, D) @ wq.T
    k = keys.reshape(N, heads, Lk, D) @ wk.T
    v = values.reshape(N, heads, Lv, D) @ wv.T
    scores = jnp.einsum("nhqd,nhkd->nhqk", q, k) / (D ** 0.5)
    attn = jax.nn.softmax(scores, axis=-1)
    out = jnp.einsum("nhqk,nhkd->nhqd", attn, v)
    out = out.transpose(0, 2, 1, 3).reshape(N, Lq, heads * D)
    return out @ wo.T + bo


if __name__ == "__main__":
    key = jax.random.PRNGKey(0)
    (kq, kv_, kk_, k1, k2, k3, k4, k5,
     kq2, kv2, kk2) = jax.random.split(key, 11)

    N, seq, embed, heads = 2, 8, 32, 4
    head_dim = embed // heads

    query = jax.random.normal(kq, (N, seq, embed), dtype=jnp.float32)
    values = jax.random.normal(kv_, (N, seq, embed), dtype=jnp.float32)
    keys = jax.random.normal(kk_, (N, seq, embed), dtype=jnp.float32)

    # deterministic parameter init (PyTorch Linear weight shape = (out, in))
    wq = jax.random.normal(k1, (head_dim, head_dim), dtype=jnp.float32) * 0.1
    wk = jax.random.normal(k2, (head_dim, head_dim), dtype=jnp.float32) * 0.1
    wv = jax.random.normal(k3, (head_dim, head_dim), dtype=jnp.float32) * 0.1
    wo = jax.random.normal(k4, (embed, embed), dtype=jnp.float32) * 0.1
    bo = jax.random.normal(k5, (embed,), dtype=jnp.float32) * 0.1

    ref = reference_mha(query, values, keys, wq, wk, wv, wo, bo, heads=heads)

    # 1) f32 path: tight parity with the PyTorch-equivalent reference.
    out = multi_head_attention(query, values, keys, wq, wk, wv, wo, bo,
                               heads=heads, mxu_dtype=None)
    out = jax.block_until_ready(out)
    assert out.shape == (N, seq, embed)
    assert jnp.allclose(out, ref, atol=2e-2, rtol=2e-2)

    # 2) Exercise the tiled / online-softmax path (multiple q- and kv-tiles).
    seq2 = 32
    query2 = jax.random.normal(kq2, (N, seq2, embed), dtype=jnp.float32)
    values2 = jax.random.normal(kv2, (N, seq2, embed), dtype=jnp.float32)
    keys2 = jax.random.normal(kk2, (N, seq2, embed), dtype=jnp.float32)
    out2 = multi_head_attention(query2, values2, keys2, wq, wk, wv, wo, bo,
                                heads=heads, tq_target=8, tk_target=8,
                                mxu_dtype=None)
    out2 = jax.block_until_ready(out2)
    ref2 = reference_mha(query2, values2, keys2, wq, wk, wv, wo, bo,
                         heads=heads)
    assert jnp.allclose(out2, ref2, atol=2e-2, rtol=2e-2)

    # 3) Default bf16-MXU path (softmax math / accumulation stay f32).
    out3 = multi_head_attention(query, values, keys, wq, wk, wv, wo, bo,
                                heads=heads)
    out3 = jax.block_until_ready(out3)
    assert jnp.allclose(out3, ref, atol=5e-2, rtol=5e-2)

    print("KERNEL_OK")
</pallas_src>

<mosaic_0001>
module attributes {stable_mosaic.version = 11 : i64} {
  func.func @_proj_kernel(%arg0: i32, %arg1: memref<64x8xf32, #tpu.memory_space<vmem>>, %arg2: memref<8x8xf32, #tpu.memory_space<vmem>>, %arg3: memref<64x8xf32, #tpu.memory_space<vmem>>) attributes {dimension_semantics = [#tpu.dimension_semantics<parallel>], iteration_bounds = array<i64: 1>, scalar_prefetch = 0 : i64, scratch_operands = 0 : i64, tpu.core_type = #tpu.core_type<tc>, window_params = [{transform_indices = @transform_0, window_bounds = array<i64: 64, 8>}, {pipeline_mode = #tpu.pipeline_mode<synchronous>, transform_indices = @transform_1, window_bounds = array<i64: 8, 8>}, {transform_indices = @transform_2, window_bounds = array<i64: 64, 8>}]} {
    %c0 = arith.constant 0 : index
    %c0_0 = arith.constant 0 : index
    %0 = vector.load %arg1[%c0, %c0_0] : memref<64x8xf32, #tpu.memory_space<vmem>>, vector<64x8xf32>
    %c0_1 = arith.constant 0 : index
    %c0_2 = arith.constant 0 : index
    %1 = vector.load %arg2[%c0_1, %c0_2] : memref<8x8xf32, #tpu.memory_space<vmem>>, vector<8x8xf32>
    %cst = arith.constant dense<0.000000e+00> : vector<64x8xf32>
    %2 = tpu.matmul %0, %1, %cst {dimension_numbers = #tpu.dot_dimension_numbers<[1], [0], [0], [1], [0, 0, 1, 1], [], []>} : vector<64x8xf32>, vector<8x8xf32>, vector<64x8xf32> -> vector<64x8xf32>
    %c0_3 = arith.constant 0 : index
    %c0_4 = arith.constant 0 : index
    %3 = vector.load %arg3[%c0_3, %c0_4] : memref<64x8xf32, #tpu.memory_space<vmem>>, vector<64x8xf32>
    tpu.vector_store %arg3[%c0_3, %c0_4], %2 {strides = array<i32>} : memref<64x8xf32, #tpu.memory_space<vmem>>, vector<64x8xf32>,
    return
  }
  func.func @transform_0(%arg0: i32) -> (i32, i32) {
    %c0_i32 = arith.constant 0 : i32
    %c0_i32_0 = arith.constant 0 : i32
    return %arg0, %c0_i32 : i32, i32
  }
  func.func @transform_1(%arg0: i32) -> (i32, i32) {
    %c0_i32 = arith.constant 0 : i32
    %c0_i32_0 = arith.constant 0 : i32
    %c0_i32_1 = arith.constant 0 : i32
    return %c0_i32, %c0_i32_0 : i32, i32
  }
  func.func @transform_2(%arg0: i32) -> (i32, i32) {
    %c0_i32 = arith.constant 0 : i32
    %c0_i32_0 = arith.constant 0 : i32
    return %arg0, %c0_i32 : i32, i32
  }
}

</mosaic_0001>

<bundles_post_ra>
// kernel: tpu_custom_call.1
= control target key start
LH: loop header
LB: loop body
LE: loop exit
PB: predicated region body
PF: predicated region fallthrough
CT: control target
= control target key end

     0   :  { %vm20_vm0 = vcmask 64512   ;;  %s277_s1 = inlined_call_operand.vmem [shape: f32[8,8], index: 1, kind: input, shape index: {}]   ;;  %s278_s0 = inlined_call_operand.vmem [shape: f32[64,8], index: 0, kind: input, shape index: {}]   ;;  %s279_s2 = inlined_call_operand.vmem [shape: f32[64,8], index: 2, kind: output, shape index: {}]  }
   0x1   :  { %v19_v0 = vld [vmem:[%s277_s1] sm:$0xff]  ;;  %v12_v3 = vld [vmem:[%s278_s0 + $0x8] sm:$0xff]  ;;  %v13_v5 = vld [vmem:[%s278_s0 + $0x10] sm:$0xff] }
   0x2   :  { %v11_v1 = vld [vmem:[%s278_s0] sm:$0xff]  ;;  %179 = vmatprep.subr.mxu0 %v19_v0  ;;  %193 = vmatprep.subr.mxu1 %v19_v0  ;;  %v16_v4 = vld [vmem:[%s278_s0 + $0x28] sm:$0xff]  ;;  %v17_v6 = vld [vmem:[%s278_s0 + $0x30] sm:$0xff] }
   0x3   :  { %v15_v2 = vld [vmem:[%s278_s0 + $0x20] sm:$0xff]  ;;  %180 = vmatpush3.msra.mxu0 %v19_v0  ;;  %194 = vmatpush3.msra.mxu1 %v19_v0  ;;  %v14_v7 = vld [vmem:[%s278_s0 + $0x18] sm:$0xff] }
   0x4   :  { %181 = vmatprep.mubr.msk.f32.mxu0 %vm20_vm0, %v11_v1  ;;  %187 = vmatprep.mubr.msk.f32.mxu1 %vm20_vm0, %v15_v2  ;;  %v18_v8 = vld [vmem:[%s278_s0 + $0x38] sm:$0xff] }
   0x5   :  { %182 = vmatmul.mubr.msk.f32.vlgmr.msra.gmra.mrb[0].mxu0 %vm20_vm0, %v12_v3  ;;  %188 = vmatmul.mubr.msk.f32.vlgmr.msra.gmra.mrb[0].mxu1 %vm20_vm0, %v16_v4 }
   0x6   :  { %184 = vmatprep.mubr.msk.f32.mxu0 %vm20_vm0, %v13_v5  ;;  %190 = vmatprep.mubr.msk.f32.mxu1 %vm20_vm0, %v17_v6 }
   0x9   :  { %185 = vmatmul.mubr.msk.f32.gmra.mrb[2].mxu0 %vm20_vm0, %v14_v7  ;;  %191 = vmatmul.mubr.msk.f32.gmra.mrb[2].mxu1 %vm20_vm0, %v18_v8 }
  0xd8   :  { %v183_v9 = vpop.f32.mrb[0].mxu0  ;;  %v189_v10 = vpop.f32.mrb[0].mxu1 }
  0xd9   :  { %151 = vst.msk [vmem:[%s279_s2 + $0x8] sm:$0xff] %vm20_vm0, %v183_v9  ;;  %155 = vst.msk [vmem:[%s279_s2 + $0x28] sm:$0xff] %vm20_vm0, %v189_v10  ;;  %v111_v11 = vpop.f32.mrb[1].mxu0  ;;  %v131_v12 = vpop.f32.mrb[1].mxu1 }
  0xda   :  { %150 = vst.msk [vmem:[%s279_s2] sm:$0xff] %vm20_vm0, %v111_v11  ;;  %154 = vst.msk [vmem:[%s279_s2 + $0x20] sm:$0xff] %vm20_vm0, %v131_v12 }
  0xdc   :  { %v186_v13 = vpop.f32.mrb[2].mxu0  ;;  %v192_v14 = vpop.f32.mrb[2].mxu1 }
  0xdd   :  { %153 = vst.msk [vmem:[%s279_s2 + $0x18] sm:$0xff] %vm20_vm0, %v186_v13  ;;  %157 = vst.msk [vmem:[%s279_s2 + $0x38] sm:$0xff] %vm20_vm0, %v192_v14  ;;  %v121_v15 = vpop.f32.mrb[3].mxu0  ;;  %v141_v16 = vpop.f32.mrb[3].mxu1 }
  0xde   :  { %152 = vst.msk [vmem:[%s279_s2 + $0x10] sm:$0xff] %vm20_vm0, %v121_v15  ;;  %156 = vst.msk [vmem:[%s279_s2 + $0x30] sm:$0xff] %vm20_vm0, %v141_v16 }

</bundles_post_ra>
